<compile_context>
chip_gen: v5e
topology: v5e:2x2
jax: 0.10.0
libtpu: 0.0.40
codegen_flags: <defaults>
</compile_context>

<pallas_src>
import jax
import jax.numpy as jnp
from jax.experimental import pallas as pl
from jax.experimental.pallas import tpu as pltpu

LN_EPS = 1e-5  # matches torch.nn.LayerNorm default


def embedding_space_kernel(xs_ref, xt_ref, w_ref, p_ref, o_ref):
    # xs_ref: [TB, Ds]   xt_ref: [TB, Dt]
    # w_ref : [Ds+Dt, De]   (grid-invariant, resident)
    # p_ref : [3, De] f32   rows = (bias, gamma, beta)  (grid-invariant, resident)
    # o_ref : [TB, De]
    ds = xs_ref.shape[-1]

    # Fused concat + Linear: [xs | xt] @ W == xs @ W[:Ds] + xt @ W[Ds:].
    # Operands stay in storage dtype (native MXU path for bf16); f32 accumulate.
    acc = jnp.dot(xs_ref[...], w_ref[:ds, :], preferred_element_type=jnp.float32)
    acc = acc + jnp.dot(xt_ref[...], w_ref[ds:, :], preferred_element_type=jnp.float32)

    # Bias + ReLU (f32 epilogue).
    y = jnp.maximum(acc + p_ref[0:1, :], 0.0)

    # One-pass LayerNorm statistics: sum and sum-of-squares together
    # (halves the XLU cross-lane reductions); var clamped at 0 against cancellation.
    inv_d = jnp.float32(1.0 / y.shape[-1])
    s1 = jnp.sum(y, axis=-1, keepdims=True)
    s2 = jnp.sum(y * y, axis=-1, keepdims=True)
    mean = s1 * inv_d
    var = jnp.maximum(s2 * inv_d - mean * mean, 0.0)
    y_norm = (y - mean) * jax.lax.rsqrt(var + LN_EPS)   # rsqrt -> EUP slot

    o_ref[...] = (y_norm * p_ref[1:2, :] + p_ref[2:3, :]).astype(o_ref.dtype)


def _min_sublane(dtype) -> int:
    return {4: 8, 2: 16, 1: 32}.get(jnp.dtype(dtype).itemsize, 8)


def _round_up(x: int, m: int) -> int:
    return ((x + m - 1) // m) * m


def _pick_batch_tile(batch: int, min_sub: int) -> int:
    """Target ~512-row tiles, but keep >= 2 grid steps (v7x has 2 TensorCores)."""
    if batch <= min_sub:
        return batch  # single tiny full-extent block
    half = _round_up(pl.cdiv(batch, 2), min_sub)
    return max(min(512, half), min_sub)


def _vmem_cap_bytes() -> int:
    """Generation-aware VMEM cap with headroom for compiler-internal scratch."""
    cap = 64 << 20  # conservative default: v7x physical VMEM
    try:
        info = pltpu.get_tpu_info()
        cap = int(getattr(info, "vmem_capacity_bytes", cap))
    except Exception:
        pass
    return max(cap - (12 << 20), 32 << 20)


def _zero_index_map(ndims: int):
    return lambda i, _n=ndims: (0,) * _n


def embedding_space_forward(spatial, temporal, w, b, gamma, beta, *, batch_tile=None):
    """spatial: [B, Ds], temporal: [B, Dt], w: [Ds+Dt, De]; returns [B, De]."""
    B, Ds = spatial.shape
    Bt, Dt = temporal.shape
    assert B == Bt, "batch mismatch between spatial and temporal features"
    D_in, De = w.shape
    assert D_in == Ds + Dt, "weight rows must equal spatial_dim + temporal_dim"

    act_dtype = spatial.dtype
    min_sub = _min_sublane(act_dtype)
    # The in-kernel weight split slices the resident weight block at row Ds.
    assert Ds % min_sub == 0, "spatial_dim must be sublane-aligned for the weight split"

    # Callers should supply the weight already in the activation dtype; this cast is
    # only a fallback (it is a separate XLA op = one extra HBM pass over the weight).
    if w.dtype != act_dtype:
        w = w.astype(act_dtype)

    if batch_tile is None:
        batch_tile = _pick_batch_tile(B, min_sub)
    batch_tile = min(int(batch_tile), B)
    assert batch_tile == B or batch_tile % min_sub == 0, (
        f"batch_tile must be a multiple of {min_sub} (sublane packing) or equal B")

    # cdiv grid: Pallas handles the ragged last block (masked reads/writes).
    grid = (pl.cdiv(B, batch_tile),)

    # Pack bias / gamma / beta into one small grid-invariant f32 block.
    params = jnp.stack([b, gamma, beta], axis=0).astype(jnp.float32)  # [3, De]

    itm = jnp.dtype(act_dtype).itemsize
    w_itm = jnp.dtype(w.dtype).itemsize

    cost = pl.CostEstimate(
        flops=2 * B * D_in * De,
        transcendentals=B,  # one rsqrt per row
        bytes_accessed=(B * (Ds + Dt) * itm      # activations in
                        + D_in * De * w_itm      # weight (read once)
                        + 3 * De * 4             # bias / gamma / beta
                        + B * De * itm),         # output
    )

    def build(single_buffer_invariants: bool):
        if single_buffer_invariants:
            def make_inv(shape):
                return pl.BlockSpec(shape, _zero_index_map(len(shape)),
                                    pipeline_mode=pl.Buffered(1))
            inv_bufs = 1
        else:
            def make_inv(shape):
                return pl.BlockSpec(shape, _zero_index_map(len(shape)))
            inv_bufs = 2

        # VMEM budget: double-buffered activation tiles (in + out) + grid-invariant
        # weight/params (x1 when single-buffered) + headroom; capped per generation.
        act_bytes = 2 * batch_tile * (Ds + Dt + De) * itm
        par_bytes = inv_bufs * (D_in * De * w_itm + 3 * De * 4)
        vmem_limit = int(min(max(act_bytes + par_bytes + (4 << 20), 16 << 20),
                             _vmem_cap_bytes()))

        return pl.pallas_call(
            embedding_space_kernel,
            out_shape=jax.ShapeDtypeStruct((B, De), act_dtype),
            grid_spec=pltpu.PrefetchScalarGridSpec(
                num_scalar_prefetch=0,
                grid=grid,
                in_specs=[
                    pl.BlockSpec((batch_tile, Ds), lambda i: (i, 0)),
                    pl.BlockSpec((batch_tile, Dt), lambda i: (i, 0)),
                    make_inv((D_in, De)),   # weight: DMA'd once, resident
                    make_inv((3, De)),      # packed bias/gamma/beta
                ],
                out_specs=pl.BlockSpec((batch_tile, De), lambda i: (i, 0)),
            ),
            compiler_params=pltpu.CompilerParams(
                # Batch tiles are independent -> megacore can shard them (v7x: 2 TCs).
                dimension_semantics=("parallel",),
                vmem_limit_bytes=vmem_limit,
            ),
            cost_estimate=cost,
        )

    try:
        # Preferred: single-buffer the grid-invariant blocks (pl.Buffered(1)).
        return build(True)(spatial, temporal, w, params)
    except Exception:
        # Fallback for JAX builds without pipeline_mode support on BlockSpec:
        # default double-buffering (correct, slightly more resident VMEM).
        return build(False)(spatial, temporal, w, params)


def reference_forward(spatial, temporal, w, b, gamma, beta):
    x = jnp.concatenate([spatial.astype(jnp.float32),
                         temporal.astype(jnp.float32)], axis=-1)
    y = x @ w.astype(jnp.float32) + b
    y = jnp.maximum(y, 0.0)
    mean = jnp.mean(y, axis=-1, keepdims=True)
    var = jnp.mean((y - mean) ** 2, axis=-1, keepdims=True)
    return (y - mean) * jax.lax.rsqrt(var + LN_EPS) * gamma + beta


if __name__ == "__main__":
    # Small shapes consistent with the module's forward signature.
    batch = 64
    spatial_dim = 48
    temporal_dim = 80
    embedding_dim = 128  # lane-dense output width

    key = jax.random.PRNGKey(0)
    k_s, k_t, k_w, k_b = jax.random.split(key, 4)

    spatial_features = jax.random.normal(k_s, (batch, spatial_dim), jnp.float32)
    temporal_features = jax.random.normal(k_t, (batch, temporal_dim), jnp.float32)

    # Deterministic parameter init (synthetic; not a checkpoint load).
    d_in = spatial_dim + temporal_dim
    bound = 1.0 / jnp.sqrt(d_in)
    # Stored as [D_in, D_emb] so the kernel computes x @ W (== torch's x @ W.T).
    w = jax.random.uniform(k_w, (d_in, embedding_dim), jnp.float32, -bound, bound)
    b = jax.random.uniform(k_b, (embedding_dim,), jnp.float32, -bound, bound)
    gamma = jnp.ones((embedding_dim,), jnp.float32)   # LayerNorm weight init
    beta = jnp.zeros((embedding_dim,), jnp.float32)   # LayerNorm bias init

    ref = reference_forward(spatial_features, temporal_features, w, b, gamma, beta)

    # f32 path, auto tile: 2-step parallel grid (pipelining + v7x megacore split).
    out = embedding_space_forward(spatial_features, temporal_features,
                                  w, b, gamma, beta)
    out = jax.block_until_ready(out)
    assert out.shape == (batch, embedding_dim)
    assert jnp.allclose(out, ref, atol=1e-4, rtol=1e-4), "f32 mismatch vs JAX reference"

    # f32 path with a non-divisor tile: exercises the cdiv grid / ragged last block.
    out_ragged = embedding_space_forward(spatial_features, temporal_features,
                                         w, b, gamma, beta, batch_tile=48)
    out_ragged = jax.block_until_ready(out_ragged)
    assert jnp.allclose(out_ragged, ref, atol=1e-4, rtol=1e-4), \
        "ragged-tile mismatch vs JAX reference"

    # bf16 path: native MXU input dtype, f32 accumulate + f32 epilogue.
    sp16 = spatial_features.astype(jnp.bfloat16)
    tp16 = temporal_features.astype(jnp.bfloat16)
    w16 = w.astype(jnp.bfloat16)   # pre-cast once, outside the kernel call path
    out16 = embedding_space_forward(sp16, tp16, w16, b, gamma, beta)
    out16 = jax.block_until_ready(out16)
    ref16 = reference_forward(sp16, tp16, w16, b, gamma, beta)
    assert jnp.allclose(out16.astype(jnp.float32), ref16, atol=2e-2, rtol=2e-2), \
        "bf16 mismatch vs JAX reference"

    print("KERNEL_OK")
</pallas_src>

<mosaic_0001>
module attributes {stable_mosaic.version = 11 : i64} {
  func.func @embedding_space_kernel(%arg0: i32, %arg1: memref<32x48xf32, #tpu.memory_space<vmem>>, %arg2: memref<32x80xf32, #tpu.memory_space<vmem>>, %arg3: memref<128x128xf32, #tpu.memory_space<vmem>>, %arg4: memref<3x128xf32, #tpu.memory_space<vmem>>, %arg5: memref<32x128xf32, #tpu.memory_space<vmem>>) attributes {dimension_semantics = [#tpu.dimension_semantics<parallel>], iteration_bounds = array<i64: 2>, scalar_prefetch = 0 : i64, scratch_operands = 0 : i64, tpu.core_type = #tpu.core_type<tc>, window_params = [{transform_indices = @transform_0, window_bounds = array<i64: 32, 48>}, {transform_indices = @transform_1, window_bounds = array<i64: 32, 80>}, {pipeline_mode = #tpu.pipeline_mode<synchronous>, transform_indices = @transform_2, window_bounds = array<i64: 128, 128>}, {pipeline_mode = #tpu.pipeline_mode<synchronous>, transform_indices = @transform_3, window_bounds = array<i64: 3, 128>}, {transform_indices = @transform_4, window_bounds = array<i64: 32, 128>}]} {
    %c0 = arith.constant 0 : index
    %c0_0 = arith.constant 0 : index
    %0 = vector.load %arg1[%c0, %c0_0] : memref<32x48xf32, #tpu.memory_space<vmem>>, vector<32x48xf32>
    %c0_1 = arith.constant 0 : index
    %c0_2 = arith.constant 0 : index
    %1 = vector.load %arg3[%c0_1, %c0_2] : memref<128x128xf32, #tpu.memory_space<vmem>>, vector<48x128xf32>
    %cst = arith.constant dense<0.000000e+00> : vector<32x128xf32>
    %2 = tpu.matmul %0, %1, %cst {dimension_numbers = #tpu.dot_dimension_numbers<[1], [0], [0], [1], [0, 0, 1, 1], [], []>} : vector<32x48xf32>, vector<48x128xf32>, vector<32x128xf32> -> vector<32x128xf32>
    %c0_3 = arith.constant 0 : index
    %c0_4 = arith.constant 0 : index
    %3 = vector.load %arg2[%c0_3, %c0_4] : memref<32x80xf32, #tpu.memory_space<vmem>>, vector<32x80xf32>
    %c48 = arith.constant 48 : index
    %c0_5 = arith.constant 0 : index
    %4 = vector.load %arg3[%c48, %c0_5] : memref<128x128xf32, #tpu.memory_space<vmem>>, vector<80x128xf32>
    %cst_6 = arith.constant dense<0.000000e+00> : vector<32x128xf32>
    %5 = tpu.matmul %3, %4, %cst_6 {dimension_numbers = #tpu.dot_dimension_numbers<[1], [0], [0], [1], [0, 0, 1, 1], [], []>} : vector<32x80xf32>, vector<80x128xf32>, vector<32x128xf32> -> vector<32x128xf32>
    %6 = arith.addf %2, %5 : vector<32x128xf32>
    %c0_7 = arith.constant 0 : index
    %c0_8 = arith.constant 0 : index
    %7 = vector.load %arg4[%c0_7, %c0_8] : memref<3x128xf32, #tpu.memory_space<vmem>>, vector<1x128xf32>
    %8 = vector.broadcast %7 : vector<1x128xf32> to vector<32x128xf32>
    %9 = arith.addf %6, %8 : vector<32x128xf32>
    %cst_9 = arith.constant 0.000000e+00 : f32
    %10 = vector.broadcast %cst_9 : f32 to vector<32x128xf32>
    %11 = arith.maximumf %9, %10 : vector<32x128xf32>
    %cst_10 = arith.constant dense<0.000000e+00> : vector<32xf32>
    %12 = vector.multi_reduction <add>, %11, %cst_10 [1] : vector<32x128xf32> to vector<32xf32>
    %13 = vector.shape_cast %12 : vector<32xf32> to vector<32x1xf32>
    %14 = arith.mulf %11, %11 : vector<32x128xf32>
    %cst_11 = arith.constant dense<0.000000e+00> : vector<32xf32>
    %15 = vector.multi_reduction <add>, %14, %cst_11 [1] : vector<32x128xf32> to vector<32xf32>
    %16 = vector.shape_cast %15 : vector<32xf32> to vector<32x1xf32>
    %cst_12 = arith.constant 7.812500e-03 : f32
    %17 = vector.broadcast %cst_12 : f32 to vector<32x1xf32>
    %18 = arith.mulf %13, %17 : vector<32x1xf32>
    %cst_13 = arith.constant 7.812500e-03 : f32
    %19 = vector.broadcast %cst_13 : f32 to vector<32x1xf32>
    %20 = arith.mulf %16, %19 : vector<32x1xf32>
    %21 = arith.mulf %18, %18 : vector<32x1xf32>
    %22 = arith.subf %20, %21 : vector<32x1xf32>
    %cst_14 = arith.constant 0.000000e+00 : f32
    %23 = vector.broadcast %cst_14 : f32 to vector<32x1xf32>
    %24 = arith.maximumf %22, %23 : vector<32x1xf32>
    %25 = vector.broadcast %18 : vector<32x1xf32> to vector<32x128xf32>
    %26 = arith.subf %11, %25 : vector<32x128xf32>
    %cst_15 = arith.constant 9.99999974E-6 : f32
    %27 = vector.broadcast %cst_15 : f32 to vector<32x1xf32>
    %28 = arith.addf %24, %27 : vector<32x1xf32>
    %29 = math.rsqrt %28 : vector<32x1xf32>
    %30 = vector.broadcast %29 : vector<32x1xf32> to vector<32x128xf32>
    %31 = arith.mulf %26, %30 : vector<32x128xf32>
    %c1 = arith.constant 1 : index
    %c0_16 = arith.constant 0 : index
    %32 = vector.load %arg4[%c1, %c0_16] : memref<3x128xf32, #tpu.memory_space<vmem>>, vector<1x128xf32>
    %33 = vector.broadcast %32 : vector<1x128xf32> to vector<32x128xf32>
    %34 = arith.mulf %31, %33 : vector<32x128xf32>
    %c2 = arith.constant 2 : index
    %c0_17 = arith.constant 0 : index
    %35 = vector.load %arg4[%c2, %c0_17] : memref<3x128xf32, #tpu.memory_space<vmem>>, vector<1x128xf32>
    %36 = vector.broadcast %35 : vector<1x128xf32> to vector<32x128xf32>
    %37 = arith.addf %34, %36 : vector<32x128xf32>
    %c0_18 = arith.constant 0 : index
    %c0_19 = arith.constant 0 : index
    %38 = vector.load %arg5[%c0_18, %c0_19] : memref<32x128xf32, #tpu.memory_space<vmem>>, vector<32x128xf32>
    tpu.vector_store %arg5[%c0_18, %c0_19], %37 {strides = array<i32>} : memref<32x128xf32, #tpu.memory_space<vmem>>, vector<32x128xf32>,
    return
  }
  func.func @transform_0(%arg0: i32) -> (i32, i32) {
    %c0_i32 = arith.constant 0 : i32
    %c0_i32_0 = arith.constant 0 : i32
    return %arg0, %c0_i32 : i32, i32
  }
  func.func @transform_1(%arg0: i32) -> (i32, i32) {
    %c0_i32 = arith.constant 0 : i32
    %c0_i32_0 = arith.constant 0 : i32
    return %arg0, %c0_i32 : i32, i32
  }
  func.func @transform_2(%arg0: i32) -> (i32, i32) {
    %c0_i32 = arith.constant 0 : i32
    %c0_i32_0 = arith.constant 0 : i32
    %c0_i32_1 = arith.constant 0 : i32
    return %c0_i32, %c0_i32_0 : i32, i32
  }
  func.func @transform_3(%arg0: i32) -> (i32, i32) {
    %c0_i32 = arith.constant 0 : i32
    %c0_i32_0 = arith.constant 0 : i32
    %c0_i32_1 = arith.constant 0 : i32
    return %c0_i32, %c0_i32_0 : i32, i32
  }
  func.func @transform_4(%arg0: i32) -> (i32, i32) {
    %c0_i32 = arith.constant 0 : i32
    %c0_i32_0 = arith.constant 0 : i32
    return %arg0, %c0_i32 : i32, i32
  }
}

module attributes {stable_mosaic.version = 11 : i64} {
  func.func @embedding_space_kernel(%arg0: i32, %arg1: memref<32x48xf32, #tpu.memory_space<vmem>>, %arg2: memref<32x80xf32, #tpu.memory_space<vmem>>, %arg3: memref<128x128xf32, #tpu.memory_space<vmem>>, %arg4: memref<3x128xf32, #tpu.memory_space<vmem>>, %arg5: memref<32x128xf32, #tpu.memory_space<vmem>>) attributes {dimension_semantics = [#tpu.dimension_semantics<parallel>], iteration_bounds = array<i64: 2>, scalar_prefetch = 0 : i64, scratch_operands = 0 : i64, tpu.core_type = #tpu.core_type<tc>, window_params = [{transform_indices = @transform_0, window_bounds = array<i64: 32, 48>}, {transform_indices = @transform_1, window_bounds = array<i64: 32, 80>}, {pipeline_mode = #tpu.pipeline_mode<synchronous>, transform_indices = @transform_2, window_bounds = array<i64: 128, 128>}, {pipeline_mode = #tpu.pipeline_mode<synchronous>, transform_indices = @transform_3, window_bounds = array<i64: 3, 128>}, {transform_indices = @transform_4, window_bounds = array<i64: 32, 128>}]} {
    %c0 = arith.constant 0 : index
    %c0_0 = arith.constant 0 : index
    %0 = vector.load %arg1[%c0, %c0_0] : memref<32x48xf32, #tpu.memory_space<vmem>>, vector<32x48xf32>
    %c0_1 = arith.constant 0 : index
    %c0_2 = arith.constant 0 : index
    %1 = vector.load %arg3[%c0_1, %c0_2] : memref<128x128xf32, #tpu.memory_space<vmem>>, vector<48x128xf32>
    %cst = arith.constant dense<0.000000e+00> : vector<32x128xf32>
    %2 = tpu.matmul %0, %1, %cst {dimension_numbers = #tpu.dot_dimension_numbers<[1], [0], [0], [1], [0, 0, 1, 1], [], []>} : vector<32x48xf32>, vector<48x128xf32>, vector<32x128xf32> -> vector<32x128xf32>
    %c0_3 = arith.constant 0 : index
    %c0_4 = arith.constant 0 : index
    %3 = vector.load %arg2[%c0_3, %c0_4] : memref<32x80xf32, #tpu.memory_space<vmem>>, vector<32x80xf32>
    %c48 = arith.constant 48 : index
    %c0_5 = arith.constant 0 : index
    %4 = vector.load %arg3[%c48, %c0_5] : memref<128x128xf32, #tpu.memory_space<vmem>>, vector<80x128xf32>
    %cst_6 = arith.constant dense<0.000000e+00> : vector<32x128xf32>
    %5 = tpu.matmul %3, %4, %cst_6 {dimension_numbers = #tpu.dot_dimension_numbers<[1], [0], [0], [1], [0, 0, 1, 1], [], []>} : vector<32x80xf32>, vector<80x128xf32>, vector<32x128xf32> -> vector<32x128xf32>
    %6 = arith.addf %2, %5 : vector<32x128xf32>
    %c0_7 = arith.constant 0 : index
    %c0_8 = arith.constant 0 : index
    %7 = vector.load %arg4[%c0_7, %c0_8] : memref<3x128xf32, #tpu.memory_space<vmem>>, vector<1x128xf32>
    %8 = vector.broadcast %7 : vector<1x128xf32> to vector<32x128xf32>
    %9 = arith.addf %6, %8 : vector<32x128xf32>
    %cst_9 = arith.constant 0.000000e+00 : f32
    %10 = vector.broadcast %cst_9 : f32 to vector<32x128xf32>
    %11 = arith.maximumf %9, %10 : vector<32x128xf32>
    %cst_10 = arith.constant dense<0.000000e+00> : vector<32xf32>
    %12 = vector.multi_reduction <add>, %11, %cst_10 [1] : vector<32x128xf32> to vector<32xf32>
    %13 = vector.shape_cast %12 : vector<32xf32> to vector<32x1xf32>
    %14 = arith.mulf %11, %11 : vector<32x128xf32>
    %cst_11 = arith.constant dense<0.000000e+00> : vector<32xf32>
    %15 = vector.multi_reduction <add>, %14, %cst_11 [1] : vector<32x128xf32> to vector<32xf32>
    %16 = vector.shape_cast %15 : vector<32xf32> to vector<32x1xf32>
    %cst_12 = arith.constant 7.812500e-03 : f32
    %17 = vector.broadcast %cst_12 : f32 to vector<32x1xf32>
    %18 = arith.mulf %13, %17 : vector<32x1xf32>
    %cst_13 = arith.constant 7.812500e-03 : f32
    %19 = vector.broadcast %cst_13 : f32 to vector<32x1xf32>
    %20 = arith.mulf %16, %19 : vector<32x1xf32>
    %21 = arith.mulf %18, %18 : vector<32x1xf32>
    %22 = arith.subf %20, %21 : vector<32x1xf32>
    %cst_14 = arith.constant 0.000000e+00 : f32
    %23 = vector.broadcast %cst_14 : f32 to vector<32x1xf32>
    %24 = arith.maximumf %22, %23 : vector<32x1xf32>
    %25 = vector.broadcast %18 : vector<32x1xf32> to vector<32x128xf32>
    %26 = arith.subf %11, %25 : vector<32x128xf32>
    %cst_15 = arith.constant 9.99999974E-6 : f32
    %27 = vector.broadcast %cst_15 : f32 to vector<32x1xf32>
    %28 = arith.addf %24, %27 : vector<32x1xf32>
    %29 = math.rsqrt %28 : vector<32x1xf32>
    %30 = vector.broadcast %29 : vector<32x1xf32> to vector<32x128xf32>
    %31 = arith.mulf %26, %30 : vector<32x128xf32>
    %c1 = arith.constant 1 : index
    %c0_16 = arith.constant 0 : index
    %32 = vector.load %arg4[%c1, %c0_16] : memref<3x128xf32, #tpu.memory_space<vmem>>, vector<1x128xf32>
    %33 = vector.broadcast %32 : vector<1x128xf32> to vector<32x128xf32>
    %34 = arith.mulf %31, %33 : vector<32x128xf32>
    %c2 = arith.constant 2 : index
    %c0_17 = arith.constant 0 : index
    %35 = vector.load %arg4[%c2, %c0_17] : memref<3x128xf32, #tpu.memory_space<vmem>>, vector<1x128xf32>
    %36 = vector.broadcast %35 : vector<1x128xf32> to vector<32x128xf32>
    %37 = arith.addf %34, %36 : vector<32x128xf32>
    %c0_18 = arith.constant 0 : index
    %c0_19 = arith.constant 0 : index
    %38 = vector.load %arg5[%c0_18, %c0_19] : memref<32x128xf32, #tpu.memory_space<vmem>>, vector<32x128xf32>
    tpu.vector_store %arg5[%c0_18, %c0_19], %37 {strides = array<i32>} : memref<32x128xf32, #tpu.memory_space<vmem>>, vector<32x128xf32>,
    return
  }
  func.func @transform_0(%arg0: i32) -> (i32, i32) {
    %c0_i32 = arith.constant 0 : i32
    %c0_i32_0 = arith.constant 0 : i32
    return %arg0, %c0_i32 : i32, i32
  }
  func.func @transform_1(%arg0: i32) -> (i32, i32) {
    %c0_i32 = arith.constant 0 : i32
    %c0_i32_0 = arith.constant 0 : i32
    return %arg0, %c0_i32 : i32, i32
  }
  func.func @transform_2(%arg0: i32) -> (i32, i32) {
    %c0_i32 = arith.constant 0 : i32
    %c0_i32_0 = arith.constant 0 : i32
    %c0_i32_1 = arith.constant 0 : i32
    return %c0_i32, %c0_i32_0 : i32, i32
  }
  func.func @transform_3(%arg0: i32) -> (i32, i32) {
    %c0_i32 = arith.constant 0 : i32
    %c0_i32_0 = arith.constant 0 : i32
    %c0_i32_1 = arith.constant 0 : i32
    return %c0_i32, %c0_i32_0 : i32, i32
  }
  func.func @transform_4(%arg0: i32) -> (i32, i32) {
    %c0_i32 = arith.constant 0 : i32
    %c0_i32_0 = arith.constant 0 : i32
    return %arg0, %c0_i32 : i32, i32
  }
}

</mosaic_0001>

<bundles_post_ra>
// kernel: tpu_custom_call.1
= control target key start
LH: loop header
LB: loop body
LE: loop exit
PB: predicated region body
PF: predicated region fallthrough
CT: control target
= control target key end

     0   :  { %9 = vsyncpa [#allocation3], 0  ;;  %s973_s0 = inlined_call_operand.vmem [shape: f32[64,48], index: 0, kind: input, shape index: {}]   ;;  %s974_s1 = inlined_call_operand.vmem [shape: f32[64,80], index: 1, kind: input, shape index: {}]   ;;  %s975_s2 = inlined_call_operand.hbm [shape: f32[128,128], index: 2, kind: input, shape index: {}]   ;;  %s976_s3 = inlined_call_operand.vmem [shape: f32[3,128], index: 3, kind: input, shape index: {}]   ;;  %s977_s4 = inlined_call_operand.hbm [shape: f32[64,128], index: 4, kind: output, shape index: {}]  }
   0x1   :  { %10 = vsyncpa [#allocation4], 0 }
   0x2   :  { %12 = vsyncpa [#allocation4 + $0x1], 0  ;;  %s800_s15 = smov 0   ;;  %s802_s16 = smov 0  }
   0x3   :  { %s804_s17 = smov 0   ;;  %s806_s18 = smov 0  }
   0x4 LB: > { %s821_s19 = sadd.s32 4294967295, %s768_s18   ;;  %s566_s20 = sadd.s32 4294967294, %s768_s18   ;;  %s768_s18 = sphi %s806_s18, %s983_s18   ;;  %s764_s17 = sphi %s804_s17, %s982_s17   ;;  %s760_s16 = sphi %s802_s16, %s981_s16   ;;  %s756_s15 = sphi %s800_s15, %s980_s15  }
   0x5   : > { %s825_s21 = sadd.s32 1, %s768_s18   ;;  %s119_s22 = sadd.s32 1, %s764_s17 }
   0x6   : > { %s116_s23 = ssub.s32 %s768_s18, %s825_s21  ;;  %p129_p0 = scmp.ne.s32.totalorder %s764_s17, %s760_s16 }
   0x7   : > { %p117_p1 = scmp.eq.s32.totalorder %s116_s23, 0  ;;  %p130_p2 = scmp.eq.s32.totalorder %s821_s19, 1 }
   0x8   : > { %p135_p3 = scmp.ne.s32.totalorder %s760_s16, %s756_s15  ;;  %p136_p4 = scmp.eq.s32.totalorder %s566_s20, 1 }
   0x9   : > { %s836_s24 = scalar_select %p117_p1, %s764_s17, %s119_s22  }
   0xa   : > { %p838_p5 = por %p130_p2, %p129_p0  ;;  %p842_p6 = por %p136_p4, %p135_p3 }
   0xb   : > { %p567_p7 = scmp.ge.s32.totalorder %s768_s18, 1  ;;  %p143_p8 = scmp.lt.s32.totalorder %s768_s18, 3 }
   0xc   : > { %p621_p9 = scmp.eq.s32.totalorder %s821_s19, 0  ;;  %s154_s29 = sshll.u32 %s975_s2, 4  ;;  %s155_s29 = int_to_ptr.hbm [resolvable:$true] %s154_s29 }
   0xd   : > { %p144_p10 = pnand %p567_p7, %p143_p8  ;;  %s770_s30 = smov [#allocation2]  }
   0xe   : > { %s156_s5 = sshll.u32 %s770_s30, 4  ;;  %s771_s6 = smov 128   ;;  %s157_s5 = int_to_ptr.vmem [resolvable:$true] %s156_s5 }
   0xf   : > { %p613_p11 = pneg %p144_p10  ;;  %s772_s7 = smov 8  }
  0x10   : > { %193 = sbr.rel (%p144_p10) target bundleno = 349 (0x15d), region = 36 }
  0x11   : > { %p614_p12 = pnand %p621_p9, %p613_p11 }
  0x13   : > { %616 = dma.hbm_to_vmem [thread:$0]  (!%p614_p12), %s155_s29, 2048, %s157_s5, [#allocation3], %s771_s6, %s771_s6, %s772_s7  }
  0x15   : > { %747 = dma.done.wait (%p621_p9), [#allocation3], 2048  }
  0x16   : > { %749 = vsyncadd (%p621_p9), [#allocation3], 4294965248  ;;  %s573_s8 = sshll.u32 %s821_s19, 2  ;;  %v261_v0 = vld [vmem:[#allocation2 + $0x78] sm:$0xff]  ;;  %v247_v1 = vld [vmem:[#allocation2 + $0x28] sm:$0xff]  ;;  %vm304_vm0 = vcmask 392192  }
  0x17   : > { %p226_p13 = scmp.lt.s32.totalorder %s573_s8, 7  ;;  %v260_v2 = vld [vmem:[#allocation2 + $0x70] sm:$0xff]  ;;  %281 = vmatpush.msra.mxu0 %v261_v0  ;;  %591 = vmatpush.msra.mxu2 %v261_v0  ;;  %v246_v3 = vld [vmem:[#allocation2 + $0x20] sm:$0xff]  ;;  %v259_v4 = vld [vmem:[#allocation2 + $0x68] sm:$0xff]  ;;  %vm262_vm1 = vcmask 654336   ;;  %s222_s27 = sand.u32 1, %s760_s16  }
  0x18   : > { %601 = vmatpush.msra.mxu3 %v247_v1  ;;  %327 = vmatpush.msra.mxu1 %v247_v1  ;;  %v245_v5 = vld [vmem:[#allocation2 + $0x18] sm:$0xff]  ;;  %v258_v6 = vld [vmem:[#allocation2 + $0x60] sm:$0xff]  ;;  %v244_v7 = vld [vmem:[#allocation2 + $0x10] sm:$0xff]  ;;  %s572_s30 = sshll.u32 %s222_s27, 5  ;;  %s465_s13 = scalar_lea.sflag [#allocation4], %s222_s27 }
  0x19   : > { %s985_s8 = smov (!%p226_p13, %s573_s8), 7  ;;  %282 = vmatpush.msra.mxu0 %v260_v2  ;;  %592 = vmatpush.msra.mxu2 %v260_v2  ;;  %v257_v8 = vld [vmem:[#allocation2 + $0x58] sm:$0xff]  ;;  %v243_v9 = vld [vmem:[#allocation2 + $0x8] sm:$0xff]  ;;  %v256_v10 = vld [vmem:[#allocation2 + $0x50] sm:$0xff]  ;;  %s927_s7 = scalar_lea.vmem [#allocation5], %s572_s30 }
  0x1a   : > { %602 = vmatpush.msra.mxu3 %v246_v3  ;;  %328 = vmatpush.msra.mxu1 %v246_v3  ;;  %s574_s9 = sshll.u32 %s985_s8, 3  ;;  %v242_v11 = vld [vmem:[#allocation2] sm:$0xff]  ;;  %v255_v13 = vld [vmem:[#allocation2 + $0x48] sm:$0xff]  ;;  %v253_v16 = vld [vmem:[#allocation2 + $0x38] sm:$0xff]  ;;  %s590_s8 = sshll.u32 %s821_s19, 5 }
  0x1b   : > { %283 = vmatpush.msra.mxu0 %v259_v4  ;;  %593 = vmatpush.msra.mxu2 %v259_v4  ;;  %s867_s12 = scalar_lea.vmem %s973_s0, %s574_s9  ;;  %v254_v15 = vld [vmem:[#allocation2 + $0x40] sm:$0xff]  ;;  %s235_s20 = scalar_lea.vmem %s974_s1, %s574_s9  ;;  %v252_v17 = vld [vmem:[#allocation2 + $0x30] sm:$0xff] }
  0x1c   : > { %603 = vmatpush.msra.mxu3 %v245_v5  ;;  %329 = vmatpush.msra.mxu1 %v245_v5  ;;  %v239_v12 = vld [vmem:[%s867_s12 + $0x8] sm:$0xff]  ;;  %v238_v14 = vld [vmem:[%s867_s12] sm:$0xff]  ;;  %v250_v19 = vld [vmem:[%s235_s20 + $0x10] sm:$0xff]  ;;  %s476_s11 = scalar_lea.hbm %s977_s4, %s590_s8  ;;  %s477_s19 = sshll.u32 %s927_s7, 4  ;;  %s478_s19 = int_to_ptr.vmem [resolvable:$true] %s477_s19 }
  0x1d   : > { %284 = vmatpush.msra.mxu0 %v258_v6  ;;  %594 = vmatpush.msra.mxu2 %v258_v6  ;;  %v248_v18 = vld [vmem:[%s235_s20] sm:$0xff]  ;;  %v240_v20 = vld [vmem:[%s867_s12 + $0x10] sm:$0xff]  ;;  %v249_v21 = vld [vmem:[%s235_s20 + $0x8] sm:$0xff]  ;;  %s722_s28 = scalar_lea.hbm %s977_s4, 64 }
  0x1e   : > { %604 = vmatpush.msra.mxu3 %v244_v7  ;;  %330 = vmatpush.msra.mxu1 %v244_v7  ;;  %v251_v22 = vld [vmem:[%s235_s20 + $0x18] sm:$0xff]  ;;  %v661_v26 = vld [vmem:[%s976_s3] ss:$0 sm:$0xff] }
  0x1f   : > { %285 = vmatpush.msra.mxu0 %v257_v8  ;;  %595 = vmatpush.msra.mxu2 %v257_v8  ;;  %v241_v23 = vld [vmem:[%s867_s12 + $0x18] sm:$0xff]  ;;  %s479_s12 = sshll.u32 %s476_s11, 4  ;;  %s480_s12 = int_to_ptr.hbm [resolvable:$true] %s479_s12 }
  0x20   : > { %605 = vmatpush.msra.mxu3 %v243_v9  ;;  %331 = vmatpush.msra.mxu1 %v243_v9  ;;  %s716_s14 = sshra.s32 %s480_s12, 4  ;;  %s717_s14 = int_to_ptr.hbm [resolvable:$true] %s716_s14 }
  0x21   : > { %286 = vmatpush.msra.mxu0 %v256_v10  ;;  %596 = vmatpush.msra.mxu2 %v256_v10  ;;  %s718_s20 = scalar_lea.hbm %s717_s14, 32  ;;  %p723_p3 = scmp.lt.s32.totalorder %s717_s14, %s977_s4 }
  0x22   : > { %606 = vmatpush.msra.mxu3 %v242_v11  ;;  %332 = vmatpush.msra.mxu1 %v242_v11  ;;  %p719_p0 = scmp.ne.s32.totalorder %s717_s14, %s718_s20  ;;  %p724_p4 = scmp.lt.s32.totalorder %s722_s28, %s718_s20 }
  0x23   : > { %582 = vmatmul.msk.f32.vlgmr.msra.gmra.mxu3 %vm304_vm0, %v239_v12  ;;  %287 = vmatpush.msra.mxu0 %v255_v13 }
  0x24   : > { %597 = vmatpush.msra.mxu2 %v255_v13  ;;  %581 = vmatmul.msk.f32.vlgmr.msra.gmra.mxu1 %vm304_vm0, %v238_v14  ;;  %p720_p1 = pnand %p719_p0, %p838_p5  ;;  %p725_p7 = por %p724_p4, %p723_p3 }
  0x25   : > { %288 = vmatpush.msra.mxu0 %v254_v15 }
  0x26   : > { %598 = vmatpush.msra.mxu2 %v254_v15  ;;  %p721_p2 = pneg %p720_p1 }
  0x27   : > { %289 = vmatpush.msra.mxu0 %v253_v16 }
  0x28   : > { %599 = vmatpush.msra.mxu2 %v253_v16  ;;  %p726_p8 = pnand %p725_p7, %p721_p2 }
  0x29   : > { %290 = vmatpush.msra.mxu0 %v252_v17 }
  0x2a   : > { %600 = vmatpush.msra.mxu2 %v252_v17  ;;  %577 = vmatmul.msk.f32.vlgmr.msra.gmra.mxu0 %vm262_vm1, %v248_v18 }
  0x2b   : > { %579 = vmatmul.msk.f32.vlgmr.msra.gmra.mxu2 %vm262_vm1, %v250_v19  ;;  %583 = vmatmul.msk.f32.gmra.mxu3 %vm304_vm0, %v240_v20 }
  0x32   : > { %578 = vmatmul.msk.f32.gmra.mxu0 %vm262_vm1, %v249_v21 }
  0x33   : > { %580 = vmatmul.msk.f32.gmra.mxu2 %vm262_vm1, %v251_v22  ;;  %584 = vmatmul.msk.f32.gmra.mxu3 %vm304_vm0, %v241_v23  ;;  %v662_v23 = vld [vmem:[%s976_s3 + $0x1] ss:$0 sm:$0xff] }
  0xa1   : > { %v334_v24 = vpop.f32.mrf.mxu1 }
  0xa6   : > { %v337_v25 = vpop.f32.mrf.mxu3 }
  0xa7   : > { %v292_v27 = vpop.f32.mrf.mxu0 }
  0xa8   : > { %v335_v28 = vadd.f32 %v334_v24, %v292_v27  ;;  %v663_v27 = vld [vmem:[%s976_s3 + $0x2] ss:$0 sm:$0xff] }
  0xaa   : > { %v348_v29 = vadd.f32 %v661_v26, %v335_v28 }
  0xac   : > { %v885_v30 = vmax.f32 %v348_v29, 0.0 }
  0xae   : > { %v298_v31 = vpop.f32.mrf.mxu2  ;;  %v340_v32 = vpop.f32.mrf.mxu3  ;;  %356 = vadd.xlane.f32.xlu0 %v885_v30  ;;  %v364_v33 = vmul.f32 %v885_v30, %v885_v30 }
  0xaf   : > { %v341_v34 = vadd.f32 %v340_v32, %v298_v31  ;;  %v295_v35 = vpop.f32.mrf.mxu0 }
  0xb0   : > { %v338_v36 = vadd.f32 %v337_v25, %v295_v35  ;;  %368 = vadd.xlane.f32.xlu2 %v364_v33 }
  0xb1   : > { %v350_v37 = vadd.f32 %v661_v26, %v341_v34 }
  0xb2   : > { %v349_v38 = vadd.f32 %v661_v26, %v338_v36 }
  0xb3   : > { %v890_v39 = vmax.f32 %v350_v37, 0.0 }
  0xb4   : > { %v892_v40 = vmax.f32 %v349_v38, 0.0 }
  0xb5   : > { %360 = vadd.xlane.f32.xlu1 %v890_v39  ;;  %v366_v47 = vmul.f32 %v890_v39, %v890_v39 }
  0xb6   : > { %v301_v41 = vpop.f32.mrf.mxu2  ;;  %v343_v42 = vpop.f32.mrf.mxu3  ;;  %358 = vadd.xlane.f32.xlu0 %v892_v40  ;;  %v365_v43 = vmul.f32 %v892_v40, %v892_v40 }
  0xb7   : > { %v344_v44 = vadd.f32 %v343_v42, %v301_v41 }
  0xb8   : > { %370 = vadd.xlane.f32.xlu2 %v365_v43 }
  0xb9   : > { %v351_v45 = vadd.f32 %v661_v26, %v344_v44 }
  0xbb   : > { %v898_v46 = vmax.f32 %v351_v45, 0.0 }
  0xbd   : > { %362 = vadd.xlane.f32.xlu1 %v898_v46  ;;  %v367_v48 = vmul.f32 %v898_v46, %v898_v46 }
  0xbe   : > { %372 = vadd.xlane.f32.xlu0 %v366_v47 }
  0xc5   : > { %374 = vadd.xlane.f32.xlu1 %v367_v48 }
 0x121   : > { %v357_v49 = vpop.xlane.xlu0 %356 }
 0x122   : > { %v376_v50 = vmul.f32 0.0078125, %v357_v49 }
 0x123   : > { %v369_v51 = vpop.xlane.xlu2 %368 }
 0x124   : > { %v384_v52 = vmul.f32 %v376_v50, %v376_v50  ;;  %v380_v53 = vmul.f32 0.0078125, %v369_v51  ;;  %v396_v22 = vsub.f32 %v885_v30, %v376_v50 }
 0x126   : > { %v388_v54 = vsub.f32 %v380_v53, %v384_v52 }
 0x128   : > { %v392_v55 = vmax.f32 %v388_v54, 0.0  ;;  %v361_v56 = vpop.xlane.xlu1 %360 }
 0x129   : > { %v359_v57 = vpop.xlane.xlu0 %358  ;;  %v909_v63 = vmul.f32 0.0078125, %v361_v56 }
 0x12a   : > { %v400_v58 = vadd.f32 1e-05, %v392_v55  ;;  %v905_v59 = vmul.f32 0.0078125, %v359_v57 }
 0x12b   : > { %v371_v60 = vpop.xlane.xlu2 %370  ;;  %v386_v5 = vmul.f32 %v909_v63, %v909_v63  ;;  %v398_v51 = vsub.f32 %v890_v39, %v909_v63 }
 0x12c   : > { %664 = vrsqrt.f32 %v400_v58  ;;  %v385_v61 = vmul.f32 %v905_v59, %v905_v59  ;;  %v381_v62 = vmul.f32 0.0078125, %v371_v60  ;;  %vm410_vm2 = vweird.f32 %v400_v58 }
 0x12d   : > { %v397_v41 = vsub.f32 %v892_v40, %v905_v59 }
 0x12e   : > { %v389_v0 = vsub.f32 %v381_v62, %v385_v61 }
 0x130   : > { %v363_v1 = vpop.xlane.xlu1 %362  ;;  %v393_v2 = vmax.f32 %v389_v0, 0.0 }
 0x131   : > { %v373_v3 = vpop.xlane.xlu0 %372  ;;  %v913_v11 = vmul.f32 0.0078125, %v363_v1 }
 0x132   : > { %v665_v4 = vpop.eup %664  ;;  %v382_v6 = vmul.f32 0.0078125, %v373_v3  ;;  %v401_v8 = vadd.f32 1e-05, %v393_v2 }
 0x133   : > { %v405_v7 = vmul.f32 %v665_v4, %v400_v58  ;;  %vm411_vm3 = vweird.f32 %v665_v4  ;;  %v387_v17 = vmul.f32 %v913_v11, %v913_v11  ;;  %v399_v39 = vsub.f32 %v898_v46, %v913_v11 }
 0x134   : > { %v390_v9 = vsub.f32 %v382_v6, %v386_v5  ;;  %666 = vrsqrt.f32 %v401_v8  ;;  %vm412_vm4 = vmor %vm410_vm2, %vm411_vm3  ;;  %vm420_vm6 = vweird.f32 %v401_v8 }
 0x135   : > { %v406_v10 = vmul.f32 %v665_v4, %v405_v7 }
 0x136   : > { %v394_v12 = vmax.f32 %v390_v9, 0.0 }
 0x137   : > { %v407_v13 = vmul.f32 0.5, %v406_v10 }
 0x138   : > { %v402_v14 = vadd.f32 1e-05, %v394_v12  ;;  %v375_v15 = vpop.xlane.xlu1 %374 }
 0x139   : > { %v408_v16 = vsub.f32 1.5, %v407_v13  ;;  %v383_v18 = vmul.f32 0.0078125, %v375_v15 }
 0x13a   : > { %668 = vrsqrt.f32 %v402_v14  ;;  %v667_v19 = vpop.eup %666  ;;  %vm430_vm9 = vweird.f32 %v402_v14 }
 0x13b   : > { %v409_v20 = vmul.f32 %v665_v4, %v408_v16  ;;  %v391_v21 = vsub.f32 %v383_v18, %v387_v17  ;;  %v415_v24 = vmul.f32 %v667_v19, %v401_v8  ;;  %vm421_vm5 = vweird.f32 %v667_v19 }
 0x13c   : > { %vm422_vm7 = vmor %vm420_vm6, %vm421_vm5 }
 0x13d   : > { %v413_v25 = vsel %vm412_vm4, %v665_v4, %v409_v20  ;;  %v395_v26 = vmax.f32 %v391_v21, 0.0  ;;  %v416_v29 = vmul.f32 %v667_v19, %v415_v24 }
 0x13e   : > { %v444_v28 = vmul.f32 %v413_v25, %v396_v22 }
 0x13f   : > { %v403_v31 = vadd.f32 1e-05, %v395_v26  ;;  %v417_v30 = vmul.f32 0.5, %v416_v29 }
 0x140   : > { %v669_v32 = vpop.eup %668  ;;  %v450_v33 = vmul.f32 %v662_v23, %v444_v28 }
 0x141   : > { %v425_v34 = vmul.f32 %v669_v32, %v402_v14  ;;  %670 = vrsqrt.f32 %v403_v31  ;;  %v418_v36 = vsub.f32 1.5, %v417_v30  ;;  %vm431_vm8 = vweird.f32 %v669_v32 }
 0x142   : > { %v456_v35 = vadd.f32 %v663_v27, %v450_v33  ;;  %vm432_vm10 = vmor %vm430_vm9, %vm431_vm8  ;;  %vm440_vm12 = vweird.f32 %v403_v31 }
 0x143   : > { %v426_v37 = vmul.f32 %v669_v32, %v425_v34  ;;  %v419_v38 = vmul.f32 %v667_v19, %v418_v36 }
 0x144   : > { %460 = vst [vmem:[%s927_s7] sm:$0xff] %v456_v35 }
 0x145   : > { %v427_v42 = vmul.f32 0.5, %v426_v37  ;;  %v423_v43 = vsel %vm422_vm7, %v667_v19, %v419_v38 }
 0x146   : > { %v445_v45 = vmul.f32 %v423_v43, %v397_v41 }
 0x147   : > { %v671_v44 = vpop.eup %670  ;;  %v428_v47 = vsub.f32 1.5, %v427_v42 }
 0x148   : > { %v435_v48 = vmul.f32 %v671_v44, %v403_v31  ;;  %v451_v49 = vmul.f32 %v662_v23, %v445_v45  ;;  %vm441_vm11 = vweird.f32 %v671_v44 }
 0x149   : > { %v429_v50 = vmul.f32 %v669_v32, %v428_v47  ;;  %vm442_vm13 = vmor %vm440_vm12, %vm441_vm11 }
 0x14a   : > { %v436_v52 = vmul.f32 %v671_v44, %v435_v48  ;;  %v457_v40 = vadd.f32 %v663_v27, %v451_v49 }
 0x14b   : > { %v433_v53 = vsel %vm432_vm10, %v669_v32, %v429_v50 }
 0x14c   : > { %v446_v54 = vmul.f32 %v433_v53, %v398_v51  ;;  %v437_v55 = vmul.f32 0.5, %v436_v52  ;;  %461 = vst [vmem:[%s927_s7 + $0x8] sm:$0xff] %v457_v40 }
 0x14e   : > { %v452_v56 = vmul.f32 %v662_v23, %v446_v54  ;;  %v438_v57 = vsub.f32 1.5, %v437_v55 }
 0x150   : > { %v458_v58 = vadd.f32 %v663_v27, %v452_v56  ;;  %v439_v59 = vmul.f32 %v671_v44, %v438_v57 }
 0x152   : > { %462 = vst [vmem:[%s927_s7 + $0x10] sm:$0xff] %v458_v58  ;;  %v443_v60 = vsel %vm442_vm13, %v671_v44, %v439_v59 }
 0x153   : > { %v447_v61 = vmul.f32 %v443_v60, %v399_v39 }
 0x155   : > { %v453_v62 = vmul.f32 %v662_v23, %v447_v61 }
 0x157   : > { %v459_v63 = vadd.f32 %v663_v27, %v453_v62 }
 0x159   : > { %463 = vst [vmem:[%s927_s7 + $0x18] sm:$0xff] %v459_v63 }
 0x15a   : > { %729 = shalt.err (!%p726_p8)
}
 0x15b   : > { %s773_s27 = smov 128   ;;  %s774_s5 = smov 8  }
 0x15c   : > { %611 = dma.vmem_to_hbm [thread:$0]  (%p838_p5), %s478_s19, 512, %s480_s12, %s465_s13, %s773_s27, %s773_s27, %s774_s5  }
 0x15d PF: > { %p623_p9 = scmp.ge.s32.totalorder %s768_s18, 2  ;;  %s494_s6 = sand.u32 1, %s756_s15  }
 0x15e   : > { %s495_s7 = scalar_lea.sflag [#allocation4], %s494_s6 }
 0x15f   : > { %p618_p10 = pnand %p623_p9, %p842_p6 }
 0x161   : > { %p619_p11 = pneg %p618_p10 }
 0x163   : > { %751 = dma.done.wait (%p619_p11), %s495_s7, 512  }
 0x164   : > { %753 = vsyncadd (%p619_p11), %s495_s7, 4294966784  ;;  %p15_p12 = scmp.ge.s32.totalorder %s825_s21, 4   ;;  %s980_s15 = smov %s760_s16 }
 0x165   : > { %s981_s16 = smov %s764_s17  ;;  %s982_s17 = smov %s836_s24 }
 0x166   : > { %s983_s18 = smov %s825_s21  ;;  %17 = sbr.rel (!%p15_p12) target bundleno = 4 (0x4), region = 79 }
 0x16b   :  { %501 = vsyncpa [#allocation3], 1 }
 0x16c   :  { %503 = vsyncpa [#allocation3 + $0x1], 1 }
 0x16d   :  { %504 = vsyncpa [#allocation4], 1 }
 0x16e   :  { %506 = vsyncpa [#allocation4 + $0x1], 1 }

// kernel: tpu_custom_call.1
= control target key start
LH: loop header
LB: loop body
LE: loop exit
PB: predicated region body
PF: predicated region fallthrough
CT: control target
= control target key end

     0   :  { %9 = vsyncpa [#allocation3], 0  ;;  %s973_s0 = inlined_call_operand.vmem [shape: f32[64,48], index: 0, kind: input, shape index: {}]   ;;  %s974_s1 = inlined_call_operand.vmem [shape: f32[64,80], index: 1, kind: input, shape index: {}]   ;;  %s975_s2 = inlined_call_operand.hbm [shape: f32[128,128], index: 2, kind: input, shape index: {}]   ;;  %s976_s3 = inlined_call_operand.vmem [shape: f32[3,128], index: 3, kind: input, shape index: {}]   ;;  %s977_s4 = inlined_call_operand.hbm [shape: f32[64,128], index: 4, kind: output, shape index: {}]  }
   0x1   :  { %10 = vsyncpa [#allocation4], 0 }
   0x2   :  { %12 = vsyncpa [#allocation4 + $0x1], 0  ;;  %s800_s15 = smov 0   ;;  %s802_s16 = smov 0  }
   0x3   :  { %s804_s17 = smov 0   ;;  %s806_s18 = smov 0  }
   0x4 LB: > { %s821_s19 = sadd.s32 4294967295, %s768_s18   ;;  %s566_s20 = sadd.s32 4294967294, %s768_s18   ;;  %s768_s18 = sphi %s806_s18, %s983_s18   ;;  %s764_s17 = sphi %s804_s17, %s982_s17   ;;  %s760_s16 = sphi %s802_s16, %s981_s16   ;;  %s756_s15 = sphi %s800_s15, %s980_s15  }
   0x5   : > { %s825_s21 = sadd.s32 1, %s768_s18   ;;  %s119_s22 = sadd.s32 1, %s764_s17 }
   0x6   : > { %s116_s23 = ssub.s32 %s768_s18, %s825_s21  ;;  %p129_p0 = scmp.ne.s32.totalorder %s764_s17, %s760_s16 }
   0x7   : > { %p117_p1 = scmp.eq.s32.totalorder %s116_s23, 0  ;;  %p130_p2 = scmp.eq.s32.totalorder %s821_s19, 1 }
   0x8   : > { %p135_p3 = scmp.ne.s32.totalorder %s760_s16, %s756_s15  ;;  %p136_p4 = scmp.eq.s32.totalorder %s566_s20, 1 }
   0x9   : > { %s836_s24 = scalar_select %p117_p1, %s764_s17, %s119_s22  }
   0xa   : > { %p838_p5 = por %p130_p2, %p129_p0  ;;  %p842_p6 = por %p136_p4, %p135_p3 }
   0xb   : > { %p567_p7 = scmp.ge.s32.totalorder %s768_s18, 1  ;;  %p143_p8 = scmp.lt.s32.totalorder %s768_s18, 3 }
   0xc   : > { %p621_p9 = scmp.eq.s32.totalorder %s821_s19, 0  ;;  %s154_s29 = sshll.u32 %s975_s2, 4  ;;  %s155_s29 = int_to_ptr.hbm [resolvable:$true] %s154_s29 }
   0xd   : > { %p144_p10 = pnand %p567_p7, %p143_p8  ;;  %s770_s30 = smov [#allocation2]  }
   0xe   : > { %s156_s5 = sshll.u32 %s770_s30, 4  ;;  %s771_s6 = smov 128   ;;  %s157_s5 = int_to_ptr.vmem [resolvable:$true] %s156_s5 }
   0xf   : > { %p613_p11 = pneg %p144_p10  ;;  %s772_s7 = smov 8  }
  0x10   : > { %193 = sbr.rel (%p144_p10) target bundleno = 349 (0x15d), region = 36 }
  0x11   : > { %p614_p12 = pnand %p621_p9, %p613_p11 }
  0x13   : > { %616 = dma.hbm_to_vmem [thread:$0]  (!%p614_p12), %s155_s29, 2048, %s157_s5, [#allocation3], %s771_s6, %s771_s6, %s772_s7  }
  0x15   : > { %747 = dma.done.wait (%p621_p9), [#allocation3], 2048  }
  0x16   : > { %749 = vsyncadd (%p621_p9), [#allocation3], 4294965248  ;;  %s573_s8 = sshll.u32 %s821_s19, 2  ;;  %v261_v0 = vld [vmem:[#allocation2 + $0x78] sm:$0xff]  ;;  %v247_v1 = vld [vmem:[#allocation2 + $0x28] sm:$0xff]  ;;  %vm304_vm0 = vcmask 392192  }
  0x17   : > { %p226_p13 = scmp.lt.s32.totalorder %s573_s8, 7  ;;  %v260_v2 = vld [vmem:[#allocation2 + $0x70] sm:$0xff]  ;;  %281 = vmatpush.msra.mxu0 %v261_v0  ;;  %591 = vmatpush.msra.mxu2 %v261_v0  ;;  %v246_v3 = vld [vmem:[#allocation2 + $0x20] sm:$0xff]  ;;  %v259_v4 = vld [vmem:[#allocation2 + $0x68] sm:$0xff]  ;;  %vm262_vm1 = vcmask 654336   ;;  %s222_s27 = sand.u32 1, %s760_s16  }
  0x18   : > { %601 = vmatpush.msra.mxu3 %v247_v1  ;;  %327 = vmatpush.msra.mxu1 %v247_v1  ;;  %v245_v5 = vld [vmem:[#allocation2 + $0x18] sm:$0xff]  ;;  %v258_v6 = vld [vmem:[#allocation2 + $0x60] sm:$0xff]  ;;  %v244_v7 = vld [vmem:[#allocation2 + $0x10] sm:$0xff]  ;;  %s572_s30 = sshll.u32 %s222_s27, 5  ;;  %s465_s13 = scalar_lea.sflag [#allocation4], %s222_s27 }
  0x19   : > { %s985_s8 = smov (!%p226_p13, %s573_s8), 7  ;;  %282 = vmatpush.msra.mxu0 %v260_v2  ;;  %592 = vmatpush.msra.mxu2 %v260_v2  ;;  %v257_v8 = vld [vmem:[#allocation2 + $0x58] sm:$0xff]  ;;  %v243_v9 = vld [vmem:[#allocation2 + $0x8] sm:$0xff]  ;;  %v256_v10 = vld [vmem:[#allocation2 + $0x50] sm:$0xff]  ;;  %s927_s7 = scalar_lea.vmem [#allocation5], %s572_s30 }
  0x1a   : > { %602 = vmatpush.msra.mxu3 %v246_v3  ;;  %328 = vmatpush.msra.mxu1 %v246_v3  ;;  %s574_s9 = sshll.u32 %s985_s8, 3  ;;  %v242_v11 = vld [vmem:[#allocation2] sm:$0xff]  ;;  %v255_v13 = vld [vmem:[#allocation2 + $0x48] sm:$0xff]  ;;  %v253_v16 = vld [vmem:[#allocation2 + $0x38] sm:$0xff]  ;;  %s590_s8 = sshll.u32 %s821_s19, 5 }
  0x1b   : > { %283 = vmatpush.msra.mxu0 %v259_v4  ;;  %593 = vmatpush.msra.mxu2 %v259_v4  ;;  %s867_s12 = scalar_lea.vmem %s973_s0, %s574_s9  ;;  %v254_v15 = vld [vmem:[#allocation2 + $0x40] sm:$0xff]  ;;  %s235_s20 = scalar_lea.vmem %s974_s1, %s574_s9  ;;  %v252_v17 = vld [vmem:[#allocation2 + $0x30] sm:$0xff] }
  0x1c   : > { %603 = vmatpush.msra.mxu3 %v245_v5  ;;  %329 = vmatpush.msra.mxu1 %v245_v5  ;;  %v239_v12 = vld [vmem:[%s867_s12 + $0x8] sm:$0xff]  ;;  %v238_v14 = vld [vmem:[%s867_s12] sm:$0xff]  ;;  %v250_v19 = vld [vmem:[%s235_s20 + $0x10] sm:$0xff]  ;;  %s476_s11 = scalar_lea.hbm %s977_s4, %s590_s8  ;;  %s477_s19 = sshll.u32 %s927_s7, 4  ;;  %s478_s19 = int_to_ptr.vmem [resolvable:$true] %s477_s19 }
  0x1d   : > { %284 = vmatpush.msra.mxu0 %v258_v6  ;;  %594 = vmatpush.msra.mxu2 %v258_v6  ;;  %v248_v18 = vld [vmem:[%s235_s20] sm:$0xff]  ;;  %v240_v20 = vld [vmem:[%s867_s12 + $0x10] sm:$0xff]  ;;  %v249_v21 = vld [vmem:[%s235_s20 + $0x8] sm:$0xff]  ;;  %s722_s28 = scalar_lea.hbm %s977_s4, 64 }
  0x1e   : > { %604 = vmatpush.msra.mxu3 %v244_v7  ;;  %330 = vmatpush.msra.mxu1 %v244_v7  ;;  %v251_v22 = vld [vmem:[%s235_s20 + $0x18] sm:$0xff]  ;;  %v661_v26 = vld [vmem:[%s976_s3] ss:$0 sm:$0xff] }
  0x1f   : > { %285 = vmatpush.msra.mxu0 %v257_v8  ;;  %595 = vmatpush.msra.mxu2 %v257_v8  ;;  %v241_v23 = vld [vmem:[%s867_s12 + $0x18] sm:$0xff]  ;;  %s479_s12 = sshll.u32 %s476_s11, 4  ;;  %s480_s12 = int_to_ptr.hbm [resolvable:$true] %s479_s12 }
  0x20   : > { %605 = vmatpush.msra.mxu3 %v243_v9  ;;  %331 = vmatpush.msra.mxu1 %v243_v9  ;;  %s716_s14 = sshra.s32 %s480_s12, 4  ;;  %s717_s14 = int_to_ptr.hbm [resolvable:$true] %s716_s14 }
  0x21   : > { %286 = vmatpush.msra.mxu0 %v256_v10  ;;  %596 = vmatpush.msra.mxu2 %v256_v10  ;;  %s718_s20 = scalar_lea.hbm %s717_s14, 32  ;;  %p723_p3 = scmp.lt.s32.totalorder %s717_s14, %s977_s4 }
  0x22   : > { %606 = vmatpush.msra.mxu3 %v242_v11  ;;  %332 = vmatpush.msra.mxu1 %v242_v11  ;;  %p719_p0 = scmp.ne.s32.totalorder %s717_s14, %s718_s20  ;;  %p724_p4 = scmp.lt.s32.totalorder %s722_s28, %s718_s20 }
  0x23   : > { %582 = vmatmul.msk.f32.vlgmr.msra.gmra.mxu3 %vm304_vm0, %v239_v12  ;;  %287 = vmatpush.msra.mxu0 %v255_v13 }
  0x24   : > { %597 = vmatpush.msra.mxu2 %v255_v13  ;;  %581 = vmatmul.msk.f32.vlgmr.msra.gmra.mxu1 %vm304_vm0, %v238_v14  ;;  %p720_p1 = pnand %p719_p0, %p838_p5  ;;  %p725_p7 = por %p724_p4, %p723_p3 }
  0x25   : > { %288 = vmatpush.msra.mxu0 %v254_v15 }
  0x26   : > { %598 = vmatpush.msra.mxu2 %v254_v15  ;;  %p721_p2 = pneg %p720_p1 }
  0x27   : > { %289 = vmatpush.msra.mxu0 %v253_v16 }
  0x28   : > { %599 = vmatpush.msra.mxu2 %v253_v16  ;;  %p726_p8 = pnand %p725_p7, %p721_p2 }
  0x29   : > { %290 = vmatpush.msra.mxu0 %v252_v17 }
  0x2a   : > { %600 = vmatpush.msra.mxu2 %v252_v17  ;;  %577 = vmatmul.msk.f32.vlgmr.msra.gmra.mxu0 %vm262_vm1, %v248_v18 }
  0x2b   : > { %579 = vmatmul.msk.f32.vlgmr.msra.gmra.mxu2 %vm262_vm1, %v250_v19  ;;  %583 = vmatmul.msk.f32.gmra.mxu3 %vm304_vm0, %v240_v20 }
  0x32   : > { %578 = vmatmul.msk.f32.gmra.mxu0 %vm262_vm1, %v249_v21 }
  0x33   : > { %580 = vmatmul.msk.f32.gmra.mxu2 %vm262_vm1, %v251_v22  ;;  %584 = vmatmul.msk.f32.gmra.mxu3 %vm304_vm0, %v241_v23  ;;  %v662_v23 = vld [vmem:[%s976_s3 + $0x1] ss:$0 sm:$0xff] }
  0xa1   : > { %v334_v24 = vpop.f32.mrf.mxu1 }
  0xa6   : > { %v337_v25 = vpop.f32.mrf.mxu3 }
  0xa7   : > { %v292_v27 = vpop.f32.mrf.mxu0 }
  0xa8   : > { %v335_v28 = vadd.f32 %v334_v24, %v292_v27  ;;  %v663_v27 = vld [vmem:[%s976_s3 + $0x2] ss:$0 sm:$0xff] }
  0xaa   : > { %v348_v29 = vadd.f32 %v661_v26, %v335_v28 }
  0xac   : > { %v885_v30 = vmax.f32 %v348_v29, 0.0 }
  0xae   : > { %v298_v31 = vpop.f32.mrf.mxu2  ;;  %v340_v32 = vpop.f32.mrf.mxu3  ;;  %356 = vadd.xlane.f32.xlu0 %v885_v30  ;;  %v364_v33 = vmul.f32 %v885_v30, %v885_v30 }
  0xaf   : > { %v341_v34 = vadd.f32 %v340_v32, %v298_v31  ;;  %v295_v35 = vpop.f32.mrf.mxu0 }
  0xb0   : > { %v338_v36 = vadd.f32 %v337_v25, %v295_v35  ;;  %368 = vadd.xlane.f32.xlu2 %v364_v33 }
  0xb1   : > { %v350_v37 = vadd.f32 %v661_v26, %v341_v34 }
  0xb2   : > { %v349_v38 = vadd.f32 %v661_v26, %v338_v36 }
  0xb3   : > { %v890_v39 = vmax.f32 %v350_v37, 0.0 }
  0xb4   : > { %v892_v40 = vmax.f32 %v349_v38, 0.0 }
  0xb5   : > { %360 = vadd.xlane.f32.xlu1 %v890_v39  ;;  %v366_v47 = vmul.f32 %v890_v39, %v890_v39 }
  0xb6   : > { %v301_v41 = vpop.f32.mrf.mxu2  ;;  %v343_v42 = vpop.f32.mrf.mxu3  ;;  %358 = vadd.xlane.f32.xlu0 %v892_v40  ;;  %v365_v43 = vmul.f32 %v892_v40, %v892_v40 }
  0xb7   : > { %v344_v44 = vadd.f32 %v343_v42, %v301_v41 }
  0xb8   : > { %370 = vadd.xlane.f32.xlu2 %v365_v43 }
  0xb9   : > { %v351_v45 = vadd.f32 %v661_v26, %v344_v44 }
  0xbb   : > { %v898_v46 = vmax.f32 %v351_v45, 0.0 }
  0xbd   : > { %362 = vadd.xlane.f32.xlu1 %v898_v46  ;;  %v367_v48 = vmul.f32 %v898_v46, %v898_v46 }
  0xbe   : > { %372 = vadd.xlane.f32.xlu0 %v366_v47 }
  0xc5   : > { %374 = vadd.xlane.f32.xlu1 %v367_v48 }
 0x121   : > { %v357_v49 = vpop.xlane.xlu0 %356 }
 0x122   : > { %v376_v50 = vmul.f32 0.0078125, %v357_v49 }
 0x123   : > { %v369_v51 = vpop.xlane.xlu2 %368 }
 0x124   : > { %v384_v52 = vmul.f32 %v376_v50, %v376_v50  ;;  %v380_v53 = vmul.f32 0.0078125, %v369_v51  ;;  %v396_v22 = vsub.f32 %v885_v30, %v376_v50 }
 0x126   : > { %v388_v54 = vsub.f32 %v380_v53, %v384_v52 }
 0x128   : > { %v392_v55 = vmax.f32 %v388_v54, 0.0  ;;  %v361_v56 = vpop.xlane.xlu1 %360 }
 0x129   : > { %v359_v57 = vpop.xlane.xlu0 %358  ;;  %v909_v63 = vmul.f32 0.0078125, %v361_v56 }
 0x12a   : > { %v400_v58 = vadd.f32 1e-05, %v392_v55  ;;  %v905_v59 = vmul.f32 0.0078125, %v359_v57 }
 0x12b   : > { %v371_v60 = vpop.xlane.xlu2 %370  ;;  %v386_v5 = vmul.f32 %v909_v63, %v909_v63  ;;  %v398_v51 = vsub.f32 %v890_v39, %v909_v63 }
 0x12c   : > { %664 = vrsqrt.f32 %v400_v58  ;;  %v385_v61 = vmul.f32 %v905_v59, %v905_v59  ;;  %v381_v62 = vmul.f32 0.0078125, %v371_v60  ;;  %vm410_vm2 = vweird.f32 %v400_v58 }
 0x12d   : > { %v397_v41 = vsub.f32 %v892_v40, %v905_v59 }
 0x12e   : > { %v389_v0 = vsub.f32 %v381_v62, %v385_v61 }
 0x130   : > { %v363_v1 = vpop.xlane.xlu1 %362  ;;  %v393_v2 = vmax.f32 %v389_v0, 0.0 }
 0x131   : > { %v373_v3 = vpop.xlane.xlu0 %372  ;;  %v913_v11 = vmul.f32 0.0078125, %v363_v1 }
 0x132   : > { %v665_v4 = vpop.eup %664  ;;  %v382_v6 = vmul.f32 0.0078125, %v373_v3  ;;  %v401_v8 = vadd.f32 1e-05, %v393_v2 }
 0x133   : > { %v405_v7 = vmul.f32 %v665_v4, %v400_v58  ;;  %vm411_vm3 = vweird.f32 %v665_v4  ;;  %v387_v17 = vmul.f32 %v913_v11, %v913_v11  ;;  %v399_v39 = vsub.f32 %v898_v46, %v913_v11 }
 0x134   : > { %v390_v9 = vsub.f32 %v382_v6, %v386_v5  ;;  %666 = vrsqrt.f32 %v401_v8  ;;  %vm412_vm4 = vmor %vm410_vm2, %vm411_vm3  ;;  %vm420_vm6 = vweird.f32 %v401_v8 }
 0x135   : > { %v406_v10 = vmul.f32 %v665_v4, %v405_v7 }
 0x136   : > { %v394_v12 = vmax.f32 %v390_v9, 0.0 }
 0x137   : > { %v407_v13 = vmul.f32 0.5, %v406_v10 }
 0x138   : > { %v402_v14 = vadd.f32 1e-05, %v394_v12  ;;  %v375_v15 = vpop.xlane.xlu1 %374 }
 0x139   : > { %v408_v16 = vsub.f32 1.5, %v407_v13  ;;  %v383_v18 = vmul.f32 0.0078125, %v375_v15 }
 0x13a   : > { %668 = vrsqrt.f32 %v402_v14  ;;  %v667_v19 = vpop.eup %666  ;;  %vm430_vm9 = vweird.f32 %v402_v14 }
 0x13b   : > { %v409_v20 = vmul.f32 %v665_v4, %v408_v16  ;;  %v391_v21 = vsub.f32 %v383_v18, %v387_v17  ;;  %v415_v24 = vmul.f32 %v667_v19, %v401_v8  ;;  %vm421_vm5 = vweird.f32 %v667_v19 }
 0x13c   : > { %vm422_vm7 = vmor %vm420_vm6, %vm421_vm5 }
 0x13d   : > { %v413_v25 = vsel %vm412_vm4, %v665_v4, %v409_v20  ;;  %v395_v26 = vmax.f32 %v391_v21, 0.0  ;;  %v416_v29 = vmul.f32 %v667_v19, %v415_v24 }
 0x13e   : > { %v444_v28 = vmul.f32 %v413_v25, %v396_v22 }
 0x13f   : > { %v403_v31 = vadd.f32 1e-05, %v395_v26  ;;  %v417_v30 = vmul.f32 0.5, %v416_v29 }
 0x140   : > { %v669_v32 = vpop.eup %668  ;;  %v450_v33 = vmul.f32 %v662_v23, %v444_v28 }
 0x141   : > { %v425_v34 = vmul.f32 %v669_v32, %v402_v14  ;;  %670 = vrsqrt.f32 %v403_v31  ;;  %v418_v36 = vsub.f32 1.5, %v417_v30  ;;  %vm431_vm8 = vweird.f32 %v669_v32 }
 0x142   : > { %v456_v35 = vadd.f32 %v663_v27, %v450_v33  ;;  %vm432_vm10 = vmor %vm430_vm9, %vm431_vm8  ;;  %vm440_vm12 = vweird.f32 %v403_v31 }
 0x143   : > { %v426_v37 = vmul.f32 %v669_v32, %v425_v34  ;;  %v419_v38 = vmul.f32 %v667_v19, %v418_v36 }
 0x144   : > { %460 = vst [vmem:[%s927_s7] sm:$0xff] %v456_v35 }
 0x145   : > { %v427_v42 = vmul.f32 0.5, %v426_v37  ;;  %v423_v43 = vsel %vm422_vm7, %v667_v19, %v419_v38 }
 0x146   : > { %v445_v45 = vmul.f32 %v423_v43, %v397_v41 }
 0x147   : > { %v671_v44 = vpop.eup %670  ;;  %v428_v47 = vsub.f32 1.5, %v427_v42 }
 0x148   : > { %v435_v48 = vmul.f32 %v671_v44, %v403_v31  ;;  %v451_v49 = vmul.f32 %v662_v23, %v445_v45  ;;  %vm441_vm11 = vweird.f32 %v671_v44 }
 0x149   : > { %v429_v50 = vmul.f32 %v669_v32, %v428_v47  ;;  %vm442_vm13 = vmor %vm440_vm12, %vm441_vm11 }
 0x14a   : > { %v436_v52 = vmul.f32 %v671_v44, %v435_v48  ;;  %v457_v40 = vadd.f32 %v663_v27, %v451_v49 }
 0x14b   : > { %v433_v53 = vsel %vm432_vm10, %v669_v32, %v429_v50 }
 0x14c   : > { %v446_v54 = vmul.f32 %v433_v53, %v398_v51  ;;  %v437_v55 = vmul.f32 0.5, %v436_v52  ;;  %461 = vst [vmem:[%s927_s7 + $0x8] sm:$0xff] %v457_v40 }
 0x14e   : > { %v452_v56 = vmul.f32 %v662_v23, %v446_v54  ;;  %v438_v57 = vsub.f32 1.5, %v437_v55 }
 0x150   : > { %v458_v58 = vadd.f32 %v663_v27, %v452_v56  ;;  %v439_v59 = vmul.f32 %v671_v44, %v438_v57 }
 0x152   : > { %462 = vst [vmem:[%s927_s7 + $0x10] sm:$0xff] %v458_v58  ;;  %v443_v60 = vsel %vm442_vm13, %v671_v44, %v439_v59 }
 0x153   : > { %v447_v61 = vmul.f32 %v443_v60, %v399_v39 }
 0x155   : > { %v453_v62 = vmul.f32 %v662_v23, %v447_v61 }
 0x157   : > { %v459_v63 = vadd.f32 %v663_v27, %v453_v62 }
 0x159   : > { %463 = vst [vmem:[%s927_s7 + $0x18] sm:$0xff] %v459_v63 }
 0x15a   : > { %729 = shalt.err (!%p726_p8)
}
 0x15b   : > { %s773_s27 = smov 128   ;;  %s774_s5 = smov 8  }
 0x15c   : > { %611 = dma.vmem_to_hbm [thread:$0]  (%p838_p5), %s478_s19, 512, %s480_s12, %s465_s13, %s773_s27, %s773_s27, %s774_s5  }
 0x15d PF: > { %p623_p9 = scmp.ge.s32.totalorder %s768_s18, 2  ;;  %s494_s6 = sand.u32 1, %s756_s15  }
 0x15e   : > { %s495_s7 = scalar_lea.sflag [#allocation4], %s494_s6 }
 0x15f   : > { %p618_p10 = pnand %p623_p9, %p842_p6 }
 0x161   : > { %p619_p11 = pneg %p618_p10 }
 0x163   : > { %751 = dma.done.wait (%p619_p11), %s495_s7, 512  }
 0x164   : > { %753 = vsyncadd (%p619_p11), %s495_s7, 4294966784  ;;  %p15_p12 = scmp.ge.s32.totalorder %s825_s21, 4   ;;  %s980_s15 = smov %s760_s16 }
 0x165   : > { %s981_s16 = smov %s764_s17  ;;  %s982_s17 = smov %s836_s24 }
 0x166   : > { %s983_s18 = smov %s825_s21  ;;  %17 = sbr.rel (!%p15_p12) target bundleno = 4 (0x4), region = 79 }
 0x16b   :  { %501 = vsyncpa [#allocation3], 1 }
 0x16c   :  { %503 = vsyncpa [#allocation3 + $0x1], 1 }
 0x16d   :  { %504 = vsyncpa [#allocation4], 1 }
 0x16e   :  { %506 = vsyncpa [#allocation4 + $0x1], 1 }

</bundles_post_ra>
